<compile_context>
chip_gen: v6e
topology: v6e:2x2x1
jax: 0.10.0
libtpu: 0.0.40
codegen_flags: <defaults>
</compile_context>

<pallas_src>
import jax
import jax.numpy as jnp
from jax.experimental import pallas as pl
from jax.experimental.pallas import tpu as pltpu


def _round_up(x, m):
    return ((x + m - 1) // m) * m


def _choose_feature_tiling(d, w_itemsize):
    """Pick padded feature dim and output-N tile so resident weights fit VMEM."""
    d_pad = _round_up(max(d, 128), 128)
    # Two (D_pad, tn) weight slabs, double-buffered, must stay well under the
    # 64 MiB v7x VMEM (also leaves room for the streaming batch tiles).
    if 2 * d_pad * d_pad * w_itemsize > (16 << 20):
        tn = 512
        d_pad = _round_up(max(d, tn), tn)
    else:
        tn = d_pad
    return d_pad, tn


def _gated_kernel(img_ref, txt_ref, w_img_ref, w_txt_ref, b_ref, out_ref):
    """One (TM, TN) output tile of  out = t + sigmoid([i, t] @ W + b) * (i - t)."""
    tn = out_ref.shape[1]
    jn = pl.program_id(0)                       # output-feature (N) tile index
    col = pl.multiple_of(jn * tn, 128)          # 128-aligned column offset

    # MXU matmuls in native operand dtype, f32 accumulation.
    h = jnp.dot(img_ref[...], w_img_ref[...], preferred_element_type=jnp.float32)
    h = h + jnp.dot(txt_ref[...], w_txt_ref[...], preferred_element_type=jnp.float32)
    h = h + b_ref[...].astype(jnp.float32)      # (1, TN) broadcasts over rows
    z = jax.nn.sigmoid(h)                       # EUP transcendental, f32

    # The gate only needs this tile's TN-wide column slab of image/text.
    img_c = img_ref[:, pl.ds(col, tn)].astype(jnp.float32)
    txt_c = txt_ref[:, pl.ds(col, tn)].astype(jnp.float32)
    out_ref[...] = (txt_c + z * (img_c - txt_c)).astype(out_ref.dtype)


def prepare_gated_weights(weight, bias, *, param_dtype=None):
    """One-time weight preprocessing (hoisted out of the per-call hot path).

    weight: (D, 2D) in PyTorch nn.Linear layout; bias: (D,).
    Returns params = (w_img, w_txt, b2d, d, d_pad, tn) in math layout, padded so
    the feature dim is lane-dense (multiple of 128 / of the N tile).
    """
    d = weight.shape[0]
    assert weight.shape == (d, 2 * d) and bias.shape == (d,)
    if param_dtype is not None:
        weight = weight.astype(param_dtype)
        bias = bias.astype(param_dtype)

    d_pad, tn = _choose_feature_tiling(d, weight.dtype.itemsize)

    w_full = weight.T                 # (2D, D): x @ W layout
    w_img = w_full[:d, :]             # (D, D)  acts on `image`
    w_txt = w_full[d:, :]             # (D, D)  acts on `text`
    if d_pad != d:
        pad = ((0, d_pad - d), (0, d_pad - d))
        w_img = jnp.pad(w_img, pad)
        w_txt = jnp.pad(w_txt, pad)
        bias = jnp.pad(bias, (0, d_pad - d))
    b2d = bias.reshape(1, d_pad)
    return (w_img, w_txt, b2d, d, d_pad, tn)


def gated_modual_forward(image, text, params, *, tm=256):
    """image, text: (B, D); params from prepare_gated_weights."""
    w_img, w_txt, b2d, d, d_pad, tn = params
    b = image.shape[0]
    assert image.shape == (b, d) and text.shape == (b, d)

    # Batch tile: multiple of 16 sublanes (covers f32 and bf16), capped at `tm`.
    tm = min(tm, _round_up(b, 16))
    b_pad = _round_up(b, tm)

    if (b_pad, d_pad) != (b, d):
        pad = ((0, b_pad - b), (0, d_pad - d))
        image_p = jnp.pad(image, pad)
        text_p = jnp.pad(text, pad)
    else:
        image_p, text_p = image, text

    num_n = d_pad // tn
    num_b = b_pad // tm
    x_bytes = image.dtype.itemsize
    w_bytes = w_img.dtype.itemsize
    o_bytes = image.dtype.itemsize

    cost = pl.CostEstimate(
        flops=4 * b_pad * d_pad * d_pad + 5 * b_pad * d_pad,
        transcendentals=b_pad * d_pad,
        bytes_accessed=int(2 * b_pad * d_pad * x_bytes
                           + (2 * d_pad * d_pad + d_pad) * w_bytes
                           + b_pad * d_pad * o_bytes),
    )

    # VMEM budget: double-buffered weight slabs + input tiles + output tile + bias.
    vmem_needed = (2 * 2 * d_pad * tn * w_bytes      # w_img + w_txt slabs
                   + 2 * 2 * tm * d_pad * x_bytes    # image + text batch tiles
                   + 2 * tm * tn * o_bytes           # output tile
                   + 2 * tn * w_bytes)               # bias
    vmem_limit = min(max(int(vmem_needed * 1.5) + (4 << 20), 16 << 20), 64 << 20)

    out_p = pl.pallas_call(
        _gated_kernel,
        out_shape=jax.ShapeDtypeStruct((b_pad, d_pad), image.dtype),
        grid_spec=pltpu.PrefetchScalarGridSpec(
            num_scalar_prefetch=0,
            # N outer, batch inner: weight slabs resident across the batch loop.
            grid=(num_n, num_b),
            in_specs=[
                pl.BlockSpec((tm, d_pad), lambda jn, ib: (ib, 0)),   # image tile
                pl.BlockSpec((tm, d_pad), lambda jn, ib: (ib, 0)),   # text tile
                pl.BlockSpec((d_pad, tn), lambda jn, ib: (0, jn)),   # W_img slab
                pl.BlockSpec((d_pad, tn), lambda jn, ib: (0, jn)),   # W_txt slab
                pl.BlockSpec((1, tn),     lambda jn, ib: (0, jn)),   # bias slab
            ],
            out_specs=pl.BlockSpec((tm, tn), lambda jn, ib: (ib, jn)),
        ),
        compiler_params=pltpu.CompilerParams(
            dimension_semantics=("parallel", "parallel"),
            vmem_limit_bytes=vmem_limit,
        ),
        cost_estimate=cost,
    )(image_p, text_p, w_img, w_txt, b2d)

    if (b_pad, d_pad) != (b, d):
        out_p = out_p[:b, :d]
    return out_p


def reference_forward(image, text, weight, bias):
    """Pure-JAX reference matching the PyTorch module exactly."""
    x = jnp.concatenate([image, text], axis=1)
    h = x @ weight.T + bias
    z = jax.nn.sigmoid(h)
    return z * image + (1.0 - z) * text


if __name__ == "__main__":
    B, D = 8, 32
    key = jax.random.PRNGKey(0)
    k_img, k_txt, k_w, k_b = jax.random.split(key, 4)

    image = jax.random.normal(k_img, (B, D), dtype=jnp.float32)
    text = jax.random.normal(k_txt, (B, D), dtype=jnp.float32)

    # Deterministic init of nn.Linear(2*dim, dim): weight (D, 2D), bias (D,).
    bound = 1.0 / jnp.sqrt(2.0 * D)
    weight = jax.random.uniform(k_w, (D, 2 * D), minval=-bound, maxval=bound,
                                dtype=jnp.float32)
    bias = jax.random.uniform(k_b, (D,), minval=-bound, maxval=bound,
                              dtype=jnp.float32)
    # NOTE: self.W (Parameter of shape (2*dim, dim)) and the tanh outputs are
    # unused in forward, so they are omitted.

    params = prepare_gated_weights(weight, bias)       # one-time preprocessing
    out = gated_modual_forward(image, text, params)
    out = jax.block_until_ready(out)

    ref = reference_forward(image, text, weight, bias)
    assert out.shape == (B, D)
    assert jnp.allclose(out, ref, atol=1e-5, rtol=1e-5), "mismatch vs reference"

    print("KERNEL_OK")
</pallas_src>

<mosaic_0001>
module attributes {stable_mosaic.version = 11 : i64} {
  func.func @_gated_kernel(%arg0: i32, %arg1: i32, %arg2: memref<16x128xf32, #tpu.memory_space<vmem>>, %arg3: memref<16x128xf32, #tpu.memory_space<vmem>>, %arg4: memref<128x128xf32, #tpu.memory_space<vmem>>, %arg5: memref<128x128xf32, #tpu.memory_space<vmem>>, %arg6: memref<1x128xf32, #tpu.memory_space<vmem>>, %arg7: memref<16x128xf32, #tpu.memory_space<vmem>>) attributes {dimension_semantics = [#tpu.dimension_semantics<parallel>, #tpu.dimension_semantics<parallel>], iteration_bounds = array<i64: 1, 1>, scalar_prefetch = 0 : i64, scratch_operands = 0 : i64, tpu.core_type = #tpu.core_type<tc>, window_params = [{transform_indices = @transform_0, window_bounds = array<i64: 16, 128>}, {transform_indices = @transform_1, window_bounds = array<i64: 16, 128>}, {transform_indices = @transform_2, window_bounds = array<i64: 128, 128>}, {transform_indices = @transform_3, window_bounds = array<i64: 128, 128>}, {transform_indices = @transform_4, window_bounds = array<i64: 1, 128>}, {transform_indices = @transform_5, window_bounds = array<i64: 16, 128>}]} {
    %c128_i32 = arith.constant 128 : i32
    %0 = arith.muli %arg0, %c128_i32 : i32
    %1 = tpu.assume_multiple %0, 128 : i32
    %c0 = arith.constant 0 : index
    %c0_0 = arith.constant 0 : index
    %2 = vector.load %arg2[%c0, %c0_0] : memref<16x128xf32, #tpu.memory_space<vmem>>, vector<16x128xf32>
    %c0_1 = arith.constant 0 : index
    %c0_2 = arith.constant 0 : index
    %3 = vector.load %arg4[%c0_1, %c0_2] : memref<128x128xf32, #tpu.memory_space<vmem>>, vector<128x128xf32>
    %cst = arith.constant dense<0.000000e+00> : vector<16x128xf32>
    %4 = tpu.matmul %2, %3, %cst {dimension_numbers = #tpu.dot_dimension_numbers<[1], [0], [0], [1], [0, 0, 1, 1], [], []>} : vector<16x128xf32>, vector<128x128xf32>, vector<16x128xf32> -> vector<16x128xf32>
    %c0_3 = arith.constant 0 : index
    %c0_4 = arith.constant 0 : index
    %5 = vector.load %arg3[%c0_3, %c0_4] : memref<16x128xf32, #tpu.memory_space<vmem>>, vector<16x128xf32>
    %c0_5 = arith.constant 0 : index
    %c0_6 = arith.constant 0 : index
    %6 = vector.load %arg5[%c0_5, %c0_6] : memref<128x128xf32, #tpu.memory_space<vmem>>, vector<128x128xf32>
    %cst_7 = arith.constant dense<0.000000e+00> : vector<16x128xf32>
    %7 = tpu.matmul %5, %6, %cst_7 {dimension_numbers = #tpu.dot_dimension_numbers<[1], [0], [0], [1], [0, 0, 1, 1], [], []>} : vector<16x128xf32>, vector<128x128xf32>, vector<16x128xf32> -> vector<16x128xf32>
    %8 = arith.addf %4, %7 : vector<16x128xf32>
    %c0_8 = arith.constant 0 : index
    %c0_9 = arith.constant 0 : index
    %9 = vector.load %arg6[%c0_8, %c0_9] : memref<1x128xf32, #tpu.memory_space<vmem>>, vector<1x128xf32>
    %10 = vector.broadcast %9 : vector<1x128xf32> to vector<16x128xf32>
    %11 = arith.addf %8, %10 : vector<16x128xf32>
    %12 = arith.negf %11 : vector<16x128xf32>
    %13 = math.exp %12 : vector<16x128xf32>
    %cst_10 = arith.constant 1.000000e+00 : f32
    %14 = vector.broadcast %cst_10 : f32 to vector<16x128xf32>
    %15 = arith.addf %14, %13 : vector<16x128xf32>
    %16 = arith.divf %14, %15 : vector<16x128xf32>
    %c0_11 = arith.constant 0 : index
    %17 = arith.index_cast %1 : i32 to index
    %18 = vector.load %arg2[%c0_11, %17] : memref<16x128xf32, #tpu.memory_space<vmem>>, vector<16x128xf32>
    %c0_12 = arith.constant 0 : index
    %19 = arith.index_cast %1 : i32 to index
    %20 = vector.load %arg3[%c0_12, %19] : memref<16x128xf32, #tpu.memory_space<vmem>>, vector<16x128xf32>
    %21 = arith.subf %18, %20 : vector<16x128xf32>
    %22 = arith.mulf %16, %21 : vector<16x128xf32>
    %23 = arith.addf %20, %22 : vector<16x128xf32>
    %c0_13 = arith.constant 0 : index
    %c0_14 = arith.constant 0 : index
    %24 = vector.load %arg7[%c0_13, %c0_14] : memref<16x128xf32, #tpu.memory_space<vmem>>, vector<16x128xf32>
    tpu.vector_store %arg7[%c0_13, %c0_14], %23 {strides = array<i32>} : memref<16x128xf32, #tpu.memory_space<vmem>>, vector<16x128xf32>,
    return
  }
  func.func @transform_0(%arg0: i32, %arg1: i32) -> (i32, i32) {
    %c0_i32 = arith.constant 0 : i32
    %c0_i32_0 = arith.constant 0 : i32
    return %arg1, %c0_i32 : i32, i32
  }
  func.func @transform_1(%arg0: i32, %arg1: i32) -> (i32, i32) {
    %c0_i32 = arith.constant 0 : i32
    %c0_i32_0 = arith.constant 0 : i32
    return %arg1, %c0_i32 : i32, i32
  }
  func.func @transform_2(%arg0: i32, %arg1: i32) -> (i32, i32) {
    %c0_i32 = arith.constant 0 : i32
    %c0_i32_0 = arith.constant 0 : i32
    return %c0_i32, %arg0 : i32, i32
  }
  func.func @transform_3(%arg0: i32, %arg1: i32) -> (i32, i32) {
    %c0_i32 = arith.constant 0 : i32
    %c0_i32_0 = arith.constant 0 : i32
    return %c0_i32, %arg0 : i32, i32
  }
  func.func @transform_4(%arg0: i32, %arg1: i32) -> (i32, i32) {
    %c0_i32 = arith.constant 0 : i32
    %c0_i32_0 = arith.constant 0 : i32
    return %c0_i32, %arg0 : i32, i32
  }
  func.func @transform_5(%arg0: i32, %arg1: i32) -> (i32, i32) {
    %c0_i32 = arith.constant 0 : i32
    return %arg1, %arg0 : i32, i32
  }
}

</mosaic_0001>

<bundles_post_ra>
// kernel: tpu_custom_call.1
= control target key start
LH: loop header
LB: loop body
LE: loop exit
PB: predicated region body
PF: predicated region fallthrough
CT: control target
= control target key end

     0   :  { %10 = vsyncpa [#allocation3], 0  ;;  %s623_s0 = inlined_call_operand.hbm [shape: f32[16,128], index: 0, kind: input, shape index: {}]   ;;  %s624_s1 = inlined_call_operand.hbm [shape: f32[16,128], index: 1, kind: input, shape index: {}]   ;;  %s625_s2 = inlined_call_operand.hbm [shape: f32[128,128], index: 2, kind: input, shape index: {}]   ;;  %s626_s3 = inlined_call_operand.hbm [shape: f32[128,128], index: 3, kind: input, shape index: {}]   ;;  %s627_s4 = inlined_call_operand.vmem [shape: f32[1,128], index: 4, kind: input, shape index: {}]   ;;  %s628_s5 = inlined_call_operand.hbm [shape: f32[16,128], index: 5, kind: output, shape index: {}]  }
   0x1   :  { %11 = vsyncpa [#allocation6], 0 }
   0x2   :  { %12 = vsyncpa [#allocation9], 0 }
   0x3   :  { %13 = vsyncpa [#allocation4], 0  ;;  %s553_s18 = smov [#allocation5]   ;;  %s554_s20 = smov [#allocation2]  }
   0x4   :  { %s31_s19 = sshll.u32 %s553_s18, 4  ;;  %s19_s21 = sshll.u32 %s554_s20, 4  ;;  %s32_s19 = int_to_ptr.vmem [resolvable:$true] %s31_s19  ;;  %s20_s21 = int_to_ptr.vmem [resolvable:$true] %s19_s21 }
   0x5   :  { %s453_s22 = scalar_lea.vmem %s32_s19, 256  ;;  %p458_p1 = scmp.lt.s32.totalorder %s32_s19, %s32_s19 }
   0x6   :  { %p454_p0 = scmp.ne.s32.totalorder %s32_s19, %s453_s22  ;;  %p459_p2 = scmp.lt.s32.totalorder %s453_s22, %s453_s22 }
   0x8   :  { %p460_p3 = por %p459_p2, %p458_p1 }
   0xa   :  { %p461_p4 = pnand %p460_p3, %p454_p0 }
   0xc   :  { %464 = shalt.err (!%p461_p4)
}
   0xd   :  { %s555_s23 = smov 128   ;;  %s556_s24 = smov 8  }
   0xe   :  { %37 = dma.hbm_to_vmem [thread:$0]  %s624_s1, 256, %s32_s19, [#allocation6], %s555_s23, %s555_s23, %s556_s24  }
   0xf   :  { %s473_s27 = scalar_lea.vmem %s20_s21, 256  ;;  %p478_p6 = scmp.lt.s32.totalorder %s20_s21, %s20_s21 }
  0x10   :  { %p474_p5 = scmp.ne.s32.totalorder %s20_s21, %s473_s27  ;;  %p479_p7 = scmp.lt.s32.totalorder %s473_s27, %s473_s27 }
  0x12   :  { %p480_p8 = por %p479_p7, %p478_p6 }
  0x14   :  { %p481_p9 = pnand %p480_p8, %p474_p5 }
  0x16   :  { %484 = shalt.err (!%p481_p9)
}
  0x17   :  { %25 = dma.hbm_to_vmem [thread:$0]  %s623_s0, 256, %s20_s21, [#allocation3], %s555_s23, %s555_s23, %s556_s24  }
  0x18   :  { %s557_s30 = smov [#allocation7]   ;;  %s558_s7 = smov [#allocation8]  }
  0x19   :  { %s43_s6 = sshll.u32 %s557_s30, 4  ;;  %s55_s8 = sshll.u32 %s558_s7, 4  ;;  %s44_s6 = int_to_ptr.vmem [resolvable:$true] %s43_s6  ;;  %s56_s8 = int_to_ptr.vmem [resolvable:$true] %s55_s8 }
  0x1a   :  { %s493_s1 = scalar_lea.vmem %s44_s6, 2048  ;;  %p498_p11 = scmp.lt.s32.totalorder %s44_s6, %s44_s6 }
  0x1b   :  { %p494_p10 = scmp.ne.s32.totalorder %s44_s6, %s493_s1  ;;  %p499_p12 = scmp.lt.s32.totalorder %s493_s1, %s493_s1 }
  0x1d   :  { %p500_p13 = por %p499_p12, %p498_p11 }
  0x1f   :  { %p501_p0 = pnand %p500_p13, %p494_p10 }
  0x21   :  { %504 = shalt.err (!%p501_p0)
}
  0x22   :  { %49 = dma.hbm_to_vmem [thread:$0]  %s625_s2, 2048, %s44_s6, [#allocation6], %s555_s23, %s555_s23, %s556_s24  }
  0x23   :  { %s513_s0 = scalar_lea.vmem %s56_s8, 2048  ;;  %p518_p2 = scmp.lt.s32.totalorder %s56_s8, %s56_s8 }
  0x24   :  { %p514_p1 = scmp.ne.s32.totalorder %s56_s8, %s513_s0  ;;  %p519_p3 = scmp.lt.s32.totalorder %s513_s0, %s513_s0 }
  0x26   :  { %p520_p4 = por %p519_p3, %p518_p2 }
  0x28   :  { %p521_p5 = pnand %p520_p4, %p514_p1 }
  0x2a   :  { %524 = shalt.err (!%p521_p5)
}
  0x2b   :  { %61 = dma.hbm_to_vmem [thread:$0]  %s626_s3, 2048, %s56_s8, [#allocation9], %s555_s23, %s555_s23, %s556_s24  }
  0x2c   :  { %545 = dma.done.wait [#allocation3], 256  }
  0x2d   :  { %546 = vsyncadd [#allocation3], 4294967040 }
  0x2e   :  { %547 = dma.done.wait [#allocation6], 2304  }
  0x2f   :  { %548 = vsyncadd [#allocation6], 4294964992 }
  0x30   :  { %549 = dma.done.wait [#allocation9], 2048  }
  0x31   :  { %550 = vsyncadd [#allocation9], 4294965248  ;;  %v112_v0 = vld [vmem:[#allocation8 + $0x78] sm:$0xff]  ;;  %v111_v2 = vld [vmem:[#allocation8 + $0x70] sm:$0xff] }
  0x32   :  { %v94_v1 = vld [vmem:[#allocation7 + $0x78] sm:$0xff]  ;;  %360 = vmatprep.subr.mxu0 %v112_v0  ;;  %v93_v3 = vld [vmem:[#allocation7 + $0x70] sm:$0xff]  ;;  %v110_v4 = vld [vmem:[#allocation8 + $0x68] sm:$0xff] }
  0x33   :  { %395 = vmatprep.subr.mxu1 %v94_v1  ;;  %361 = vmatpush3.msra.mxu0 %v112_v0  ;;  %v92_v5 = vld [vmem:[#allocation7 + $0x68] sm:$0xff]  ;;  %v109_v6 = vld [vmem:[#allocation8 + $0x60] sm:$0xff]  ;;  %v108_v8 = vld [vmem:[#allocation8 + $0x58] sm:$0xff] }
  0x34   :  { %396 = vmatpush3.msra.mxu1 %v94_v1  ;;  %362 = vmatprep.subr.mxu0 %v111_v2  ;;  %v91_v7 = vld [vmem:[#allocation7 + $0x60] sm:$0xff]  ;;  %v90_v9 = vld [vmem:[#allocation7 + $0x58] sm:$0xff]  ;;  %v107_v10 = vld [vmem:[#allocation8 + $0x50] sm:$0xff] }
  0x35   :  { %397 = vmatprep.subr.mxu1 %v93_v3  ;;  %363 = vmatpush3.msra.mxu0 %v111_v2  ;;  %v89_v11 = vld [vmem:[#allocation7 + $0x50] sm:$0xff]  ;;  %v106_v12 = vld [vmem:[#allocation8 + $0x48] sm:$0xff]  ;;  %v105_v14 = vld [vmem:[#allocation8 + $0x40] sm:$0xff] }
  0x36   :  { %398 = vmatpush3.msra.mxu1 %v93_v3  ;;  %364 = vmatprep.subr.mxu0 %v110_v4  ;;  %v88_v13 = vld [vmem:[#allocation7 + $0x48] sm:$0xff]  ;;  %v87_v15 = vld [vmem:[#allocation7 + $0x40] sm:$0xff]  ;;  %v104_v16 = vld [vmem:[#allocation8 + $0x38] sm:$0xff] }
  0x37   :  { %399 = vmatprep.subr.mxu1 %v92_v5  ;;  %365 = vmatpush3.msra.mxu0 %v110_v4  ;;  %v86_v17 = vld [vmem:[#allocation7 + $0x38] sm:$0xff]  ;;  %v103_v18 = vld [vmem:[#allocation8 + $0x30] sm:$0xff]  ;;  %v102_v20 = vld [vmem:[#allocation8 + $0x28] sm:$0xff] }
  0x38   :  { %400 = vmatpush3.msra.mxu1 %v92_v5  ;;  %366 = vmatprep.subr.mxu0 %v109_v6  ;;  %v85_v19 = vld [vmem:[#allocation7 + $0x30] sm:$0xff]  ;;  %v84_v21 = vld [vmem:[#allocation7 + $0x28] sm:$0xff]  ;;  %v101_v22 = vld [vmem:[#allocation8 + $0x20] sm:$0xff] }
  0x39   :  { %401 = vmatprep.subr.mxu1 %v91_v7  ;;  %367 = vmatpush3.msra.mxu0 %v109_v6  ;;  %v83_v23 = vld [vmem:[#allocation7 + $0x20] sm:$0xff]  ;;  %v100_v24 = vld [vmem:[#allocation8 + $0x18] sm:$0xff]  ;;  %v99_v26 = vld [vmem:[#allocation8 + $0x10] sm:$0xff] }
  0x3a   :  { %402 = vmatpush3.msra.mxu1 %v91_v7  ;;  %368 = vmatprep.subr.mxu0 %v108_v8  ;;  %v82_v25 = vld [vmem:[#allocation7 + $0x18] sm:$0xff]  ;;  %v81_v27 = vld [vmem:[#allocation7 + $0x10] sm:$0xff]  ;;  %v98_v28 = vld [vmem:[#allocation8 + $0x8] sm:$0xff] }
  0x3b   :  { %403 = vmatprep.subr.mxu1 %v90_v9  ;;  %369 = vmatpush3.msra.mxu0 %v108_v8  ;;  %v80_v29 = vld [vmem:[#allocation7 + $0x8] sm:$0xff]  ;;  %v97_v30 = vld [vmem:[#allocation8] sm:$0xff]  ;;  %v95_v32 = vld [vmem:[#allocation5] sm:$0xff] }
  0x3c   :  { %404 = vmatpush3.msra.mxu1 %v90_v9  ;;  %370 = vmatprep.subr.mxu0 %v107_v10  ;;  %v79_v31 = vld [vmem:[#allocation7] sm:$0xff]  ;;  %v96_v34 = vld [vmem:[#allocation5 + $0x8] sm:$0xff]  ;;  %v78_v35 = vld [vmem:[#allocation2 + $0x8] sm:$0xff] }
  0x3d   :  { %405 = vmatprep.subr.mxu1 %v89_v11  ;;  %371 = vmatpush3.msra.mxu0 %v107_v10  ;;  %v77_v33 = vld [vmem:[#allocation2] sm:$0xff]  ;;  %v293_v51 = vsub.f32 %v78_v35, %v96_v34 }
  0x3e   :  { %406 = vmatpush3.msra.mxu1 %v89_v11  ;;  %372 = vmatprep.subr.mxu0 %v106_v12  ;;  %v321_v38 = vld [vmem:[%s627_s4] ss:$0 sm:$0xff]  ;;  %v292_v52 = vsub.f32 %v77_v33, %v95_v32  ;;  %s559_s4 = smov [#allocation10]  }
  0x3f   :  { %407 = vmatprep.subr.mxu1 %v88_v13  ;;  %373 = vmatpush3.msra.mxu0 %v106_v12  ;;  %s305_s13 = sshll.u32 %s559_s4, 4  ;;  %s306_s13 = int_to_ptr.vmem [resolvable:$true] %s305_s13 }
  0x40   :  { %408 = vmatpush3.msra.mxu1 %v88_v13  ;;  %374 = vmatprep.subr.mxu0 %v105_v14  ;;  %s525_s14 = scalar_lea.vmem %s306_s13, 256  ;;  %p530_p7 = scmp.lt.s32.totalorder %s306_s13, %s306_s13 }
  0x41   :  { %409 = vmatprep.subr.mxu1 %v87_v15  ;;  %375 = vmatpush3.msra.mxu0 %v105_v14  ;;  %p526_p6 = scmp.ne.s32.totalorder %s306_s13, %s525_s14  ;;  %p531_p8 = scmp.lt.s32.totalorder %s525_s14, %s525_s14 }
  0x42   :  { %410 = vmatpush3.msra.mxu1 %v87_v15  ;;  %376 = vmatprep.subr.mxu0 %v104_v16 }
  0x43   :  { %411 = vmatprep.subr.mxu1 %v86_v17  ;;  %377 = vmatpush3.msra.mxu0 %v104_v16  ;;  %p532_p9 = por %p531_p8, %p530_p7 }
  0x44   :  { %412 = vmatpush3.msra.mxu1 %v86_v17  ;;  %378 = vmatprep.subr.mxu0 %v103_v18 }
  0x45   :  { %413 = vmatprep.subr.mxu1 %v85_v19  ;;  %379 = vmatpush3.msra.mxu0 %v103_v18  ;;  %p533_p10 = pnand %p532_p9, %p526_p6 }
  0x46   :  { %414 = vmatpush3.msra.mxu1 %v85_v19  ;;  %380 = vmatprep.subr.mxu0 %v102_v20 }
  0x47   :  { %415 = vmatprep.subr.mxu1 %v84_v21  ;;  %381 = vmatpush3.msra.mxu0 %v102_v20 }
  0x48   :  { %416 = vmatpush3.msra.mxu1 %v84_v21  ;;  %382 = vmatprep.subr.mxu0 %v101_v22 }
  0x49   :  { %417 = vmatprep.subr.mxu1 %v83_v23  ;;  %383 = vmatpush3.msra.mxu0 %v101_v22 }
  0x4a   :  { %418 = vmatpush3.msra.mxu1 %v83_v23  ;;  %384 = vmatprep.subr.mxu0 %v100_v24 }
  0x4b   :  { %419 = vmatprep.subr.mxu1 %v82_v25  ;;  %385 = vmatpush3.msra.mxu0 %v100_v24 }
  0x4c   :  { %420 = vmatpush3.msra.mxu1 %v82_v25  ;;  %386 = vmatprep.subr.mxu0 %v99_v26 }
  0x4d   :  { %421 = vmatprep.subr.mxu1 %v81_v27  ;;  %387 = vmatpush3.msra.mxu0 %v99_v26 }
  0x4e   :  { %422 = vmatpush3.msra.mxu1 %v81_v27  ;;  %388 = vmatprep.subr.mxu0 %v98_v28 }
  0x4f   :  { %423 = vmatprep.subr.mxu1 %v80_v29  ;;  %389 = vmatpush3.msra.mxu0 %v98_v28 }
  0x50   :  { %424 = vmatpush3.msra.mxu1 %v80_v29  ;;  %390 = vmatprep.subr.mxu0 %v97_v30 }
  0x51   :  { %425 = vmatprep.subr.mxu1 %v79_v31  ;;  %391 = vmatpush3.msra.mxu0 %v97_v30 }
  0x52   :  { %392 = vmatprep.mubr.f32.mxu0 %v95_v32  ;;  %426 = vmatpush3.msra.mxu1 %v79_v31 }
  0x53   :  { %427 = vmatprep.mubr.f32.mxu1 %v77_v33  ;;  %393 = vmatmul.mubr.f32.vlgmr.msra.gmra.mxu0 %v96_v34 }
  0x54   :  { %428 = vmatmul.mubr.f32.vlgmr.msra.gmra.mxu1 %v78_v35 }
 0x113   :  { %v394_v36 = vpop.f32.mrf.mxu0 }
 0x114   :  { %v429_v37 = vpop.f32.mrf.mxu1 }
 0x115   :  { %v260_v39 = vadd.f32 %v429_v37, %v394_v36  ;;  %v179_v40 = vpop.f32.mrf.mxu0 }
 0x116   :  { %v254_v41 = vpop.f32.mrf.mxu1 }
 0x117   :  { %v271_v42 = vadd.f32 %v321_v38, %v260_v39  ;;  %v255_v43 = vadd.f32 %v254_v41, %v179_v40 }
 0x119   :  { %v323_v44 = vmul.f32 -1.442695, %v271_v42  ;;  %v270_v45 = vadd.f32 %v321_v38, %v255_v43 }
 0x11b   :  { %437 = vpow2.f32 %v323_v44  ;;  %v322_v46 = vmul.f32 -1.442695, %v270_v45 }
 0x11d   :  { %439 = vpow2.f32 %v322_v46 }
 0x128   :  { %v438_v47 = vpop.eup %437 }
 0x129   :  { %v279_v48 = vadd.f32 1.0, %v438_v47 }
 0x12a   :  { %v440_v49 = vpop.eup %439 }
 0x12b   :  { %441 = vrcp.f32 %v279_v48  ;;  %v278_v50 = vadd.f32 1.0, %v440_v49 }
 0x12d   :  { %443 = vrcp.f32 %v278_v50 }
 0x138   :  { %v442_v53 = vpop.eup %441 }
 0x139   :  { %v295_v54 = vmul.f32 %v442_v53, %v293_v51 }
 0x13a   :  { %v444_v55 = vpop.eup %443 }
 0x13b   :  { %v294_v56 = vmul.f32 %v444_v55, %v292_v52  ;;  %v297_v57 = vadd.f32 %v295_v54, %v96_v34 }
 0x13d   :  { %v296_v58 = vadd.f32 %v294_v56, %v95_v32  ;;  %299 = vst [vmem:[#allocation10 + $0x8] sm:$0xff] %v297_v57 }
 0x13f   :  { %298 = vst [vmem:[#allocation10] sm:$0xff] %v296_v58 }
 0x140   :  { %536 = shalt.err (!%p533_p10)
}
 0x141   :  { %311 = dma.vmem_to_hbm [thread:$0]  %s306_s13, 256, %s628_s5, [#allocation4], %s555_s23, %s555_s23, %s556_s24  }
 0x142   :  { %551 = dma.done.wait [#allocation4], 256  }
 0x143   :  { %552 = vsyncadd [#allocation4], 4294967040 }
 0x144   :  { %315 = vsyncpa [#allocation3], 1 }
 0x145   :  { %316 = vsyncpa [#allocation6], 1 }
 0x146   :  { %317 = vsyncpa [#allocation9], 1 }
 0x147   :  { %318 = vsyncpa [#allocation4], 1 }

</bundles_post_ra>
